<compile_context>
chip_gen: v5e
topology: v5e:2x2
jax: 0.10.0
libtpu: 0.0.40
codegen_flags: <defaults>
</compile_context>

<pallas_src>
import jax
import jax.numpy as jnp
from jax.experimental import pallas as pl
from jax.experimental.pallas import tpu as pltpu


def _round_up(x, m):
    return (x + m - 1) // m * m


def _cdiv(a, b):
    return -(-a // b)


def _gelu_tanh(x):
    # tanh-approximate GELU (lowers cleanly to VPU/EUP on TPU).
    # torch.nn.GELU() default is the exact erf form; max abs diff ~1e-3.
    c = 0.7978845608028654  # sqrt(2/pi)
    return 0.5 * x * (1.0 + jnp.tanh(c * (x + 0.044715 * x * x * x)))


# ------------------------------ fused FFN kernel -----------------------------
def _ffn_kernel(x_ref, w1_ref, b1_ref, w2_ref, b2_ref, o_ref, acc_ref):
    j = pl.program_id(1)

    @pl.when(j == 0)
    def _():
        acc_ref[...] = jnp.zeros_like(acc_ref)

    x = x_ref[...].astype(jnp.bfloat16)                     # feed the MXU bf16
    h = jnp.dot(x, w1_ref[...], preferred_element_type=jnp.float32)
    h = _gelu_tanh(h + b1_ref[...])                         # f32 bias + GELU
    # TODO(synk): dropout for p>0 in training mode would use pltpu.prng_seed /
    # pltpu.prng_random_bits; p=0.0 / eval mode is the identity.
    acc_ref[...] += jnp.dot(h.astype(jnp.bfloat16), w2_ref[...],
                            preferred_element_type=jnp.float32)

    @pl.when(j == pl.num_programs(1) - 1)
    def _():
        o_ref[...] = (acc_ref[...] + b2_ref[...]).astype(o_ref.dtype)


def _spec(shape, index_map, pipeline_mode=None):
    """BlockSpec helper; pipeline_mode kwarg is optional across jax versions."""
    if pipeline_mode is None:
        return pl.BlockSpec(shape, index_map)
    try:
        return pl.BlockSpec(shape, index_map, pipeline_mode=pipeline_mode)
    except TypeError:  # older jax: no pipeline_mode kwarg -> default buffering
        return pl.BlockSpec(shape, index_map)


def _vmem_capacity_bytes():
    try:
        info = pltpu.get_tpu_info()
        return int(getattr(info, "vmem_capacity_bytes", 64 << 20))
    except Exception:
        return 64 << 20  # conservative (v7x per-TC value)


def _select_tiles(Dp, Hp, vmem_cap):
    """Pick (row_block, h_tile) so the live VMEM footprint fits the budget."""
    budget = int(vmem_cap * 0.80)
    for rb in (512, 256, 128):
        # Row-tile bytes independent of h_tile: x/out tiles (double-buffered,
        # f32), f32 accumulator scratch, b2, headroom.
        fixed = 2 * rb * Dp * 4 * 2 + rb * Dp * 4 + Dp * 4 + (6 << 20)
        # Per hidden-column bytes: w1+w2 bf16 (double-buffered) + b1 + f32
        # hidden activations (+ ~2 GELU temporaries) + bf16 copy of h.
        per_h = 2 * (2 * Dp * 2) + 4 + rb * 4 * 3 + rb * 2
        ht = (budget - fixed) // per_h
        ht = min(Hp, (ht // 128) * 128)
        if ht >= 128:
            return rb, int(ht)
    return 128, 128  # minimal fallback


def feedforward_pallas(x2d, w1, b1, w2, b2, *, row_block=None, h_tile=None):
    """x2d: (M, D); w1: (D, H); b1: (H,); w2: (H, D); b2: (D,)."""
    M, D = x2d.shape
    H = w1.shape[1]
    assert w1.shape[0] == D and w2.shape == (H, D)
    assert b1.shape == (H,) and b2.shape == (D,)

    out_dtype = x2d.dtype
    isz = jnp.dtype(out_dtype).itemsize
    sub = max(8, 32 // isz)          # sublane multiple: f32->8, bf16->16

    # Lane-dense feature dims (multiples of 128): zero padding is exact
    # (padded hidden cols give GELU(0)=0 and padded w2 rows/b2 entries are 0).
    Dp = _round_up(D, 128)
    Hp128 = _round_up(H, 128)

    vmem_cap = _vmem_capacity_bytes()
    if row_block is None or h_tile is None:
        rb_auto, ht_auto = _select_tiles(Dp, Hp128, vmem_cap)
        if row_block is None:
            row_block = rb_auto
        if h_tile is None:
            h_tile = ht_auto

    # Even, lane-dense split of the hidden dim into n_h tiles.
    h_tile = max(128, min(h_tile, Hp128))
    n_h = max(1, _cdiv(Hp128, h_tile))
    h_tile = _round_up(_cdiv(Hp128, n_h), 128)
    Hp = n_h * h_tile

    # Small inputs: shrink the row tile; when there are enough rows, split
    # into >=2 tiles so the "parallel" row axis shards across both TCs (v7x).
    m_rounded = _round_up(M, sub)
    if m_rounded <= row_block:
        row_block = _round_up(_cdiv(m_rounded, 2), sub) if m_rounded >= 256 \
            else m_rounded

    M_pad = _round_up(M, row_block)
    n_rows = M_pad // row_block

    # One-time padding / casting outside the kernel.
    if M_pad != M or Dp != D:
        x2d = jnp.pad(x2d, ((0, M_pad - M), (0, Dp - D)))
    if Dp != D or Hp != H:
        w1 = jnp.pad(w1, ((0, Dp - D), (0, Hp - H)))
        w2 = jnp.pad(w2, ((0, Hp - H), (0, Dp - D)))
        b1 = jnp.pad(b1, (0, Hp - H))
        b2 = jnp.pad(b2, (0, Dp - D))
    w1 = w1.astype(jnp.bfloat16)                  # MXU peak rate is bf16
    w2 = w2.astype(jnp.bfloat16)
    b1 = b1.astype(jnp.float32).reshape(1, Hp)    # biases stay f32 (f32 acc)
    b2 = b2.astype(jnp.float32).reshape(1, Dp)

    # Resident (n_h == 1) weights only need a single buffer; streamed H tiles
    # keep the default double buffering.
    w_mode = pl.Buffered(1) if n_h == 1 else None

    # VMEM estimate: streamed tiles + accumulator + weight buffers + hidden
    # activations (+GELU temporaries) + bf16 casts + headroom.
    w_bufs = 1 if n_h == 1 else 2
    computed = (
        2 * row_block * Dp * isz * 2                       # x + out, 2 bufs
        + row_block * Dp * 4                               # f32 accumulator
        + w_bufs * (2 * Dp * h_tile * 2 + h_tile * 4)      # w1,w2 bf16 + b1
        + Dp * 4                                           # b2
        + 3 * row_block * h_tile * 4                       # hidden f32 + temps
        + row_block * (Dp + h_tile) * 2                    # bf16 casts
        + (8 << 20)                                        # headroom
    )
    # Generation-aware cap: ~85% of physical VMEM (v7x 64 MiB, v5e/v6e 128 MiB).
    vmem_limit = int(min(int(vmem_cap * 0.85), max(32 << 20, computed)))

    out = pl.pallas_call(
        _ffn_kernel,
        out_shape=jax.ShapeDtypeStruct((M_pad, Dp), out_dtype),
        grid_spec=pltpu.PrefetchScalarGridSpec(
            num_scalar_prefetch=0,
            grid=(n_rows, n_h),
            in_specs=[
                _spec((row_block, Dp), lambda i, j: (i, 0)),          # x rows
                _spec((Dp, h_tile), lambda i, j: (0, j), w_mode),     # w1
                _spec((1, h_tile), lambda i, j: (0, j), w_mode),      # b1
                _spec((h_tile, Dp), lambda i, j: (j, 0), w_mode),     # w2
                _spec((1, Dp), lambda i, j: (0, 0), pl.Buffered(1)),  # b2
            ],
            out_specs=_spec((row_block, Dp), lambda i, j: (i, 0)),
            scratch_shapes=[pltpu.VMEM((row_block, Dp), jnp.float32)],
        ),
        compiler_params=pltpu.CompilerParams(
            dimension_semantics=("parallel", "arbitrary"),
            vmem_limit_bytes=vmem_limit,
        ),
    )(x2d, w1, b1, w2, b2)

    if M_pad != M or Dp != D:
        out = out[:M, :D]
    return out


# --------------------------------- FeedForward --------------------------------
class FeedForward:
    """Pallas port of FeedForward(dim, hidden_dim, dropout):
    Linear(dim, hidden) -> GELU -> Dropout -> Linear(hidden, dim) -> Dropout."""

    def __init__(self, dim, hidden_dim, dropout=0.0, *, key=None):
        self.dim, self.hidden_dim, self.dropout = dim, hidden_dim, dropout
        key = jax.random.PRNGKey(0) if key is None else key
        k1, k2, k3, k4 = jax.random.split(key, 4)
        lim1 = 1.0 / (dim ** 0.5)        # torch nn.Linear init range
        lim2 = 1.0 / (hidden_dim ** 0.5)
        # bf16 master weights (MXU-native); biases kept f32 for the f32 acc.
        self.w1 = jax.random.uniform(k1, (dim, hidden_dim), jnp.float32,
                                     -lim1, lim1).astype(jnp.bfloat16)
        self.b1 = jax.random.uniform(k2, (hidden_dim,), jnp.float32, -lim1, lim1)
        self.w2 = jax.random.uniform(k3, (hidden_dim, dim), jnp.float32,
                                     -lim2, lim2).astype(jnp.bfloat16)
        self.b2 = jax.random.uniform(k4, (dim,), jnp.float32, -lim2, lim2)

    def __call__(self, x):
        B, N, D = x.shape
        y = feedforward_pallas(x.reshape(B * N, D),
                               self.w1, self.b1, self.w2, self.b2)
        return y.reshape(B, N, D)


# ------------------------------------ main ------------------------------------
if __name__ == "__main__":
    B, N, dim, hidden_dim = 2, 8, 32, 64

    key = jax.random.PRNGKey(0)
    kx, kp = jax.random.split(key)
    x = jax.random.normal(kx, (B, N, dim), dtype=jnp.float32)

    ffn = FeedForward(dim, hidden_dim, dropout=0.0, key=kp)
    out = jax.block_until_ready(ffn(x))

    # Plain-JAX reference mirroring the kernel math (bf16 MXU inputs, f32
    # accumulation, tanh-GELU; dropout p=0 is the identity).
    xf = x.reshape(B * N, dim).astype(jnp.bfloat16).astype(jnp.float32)
    w1f = ffn.w1.astype(jnp.float32)
    w2f = ffn.w2.astype(jnp.float32)
    h_ref = _gelu_tanh(xf @ w1f + ffn.b1)
    h_ref = h_ref.astype(jnp.bfloat16).astype(jnp.float32)
    ref = (h_ref @ w2f + ffn.b2).reshape(B, N, dim)

    assert out.shape == (B, N, dim)
    max_err = float(jnp.max(jnp.abs(out - ref)))
    assert jnp.allclose(out, ref, atol=5e-3, rtol=5e-3), max_err
    print("KERNEL_OK")
</pallas_src>

<mosaic_0001>
module attributes {stable_mosaic.version = 11 : i64} {
  func.func @_ffn_kernel(%arg0: i32, %arg1: i32, %arg2: memref<16x128xf32, #tpu.memory_space<vmem>>, %arg3: memref<128x128xbf16, #tpu.memory_space<vmem>>, %arg4: memref<1x128xf32, #tpu.memory_space<vmem>>, %arg5: memref<128x128xbf16, #tpu.memory_space<vmem>>, %arg6: memref<1x128xf32, #tpu.memory_space<vmem>>, %arg7: memref<16x128xf32, #tpu.memory_space<vmem>>, %arg8: memref<16x128xf32, #tpu.memory_space<vmem>>) attributes {dimension_semantics = [#tpu.dimension_semantics<parallel>, #tpu.dimension_semantics<arbitrary>], iteration_bounds = array<i64: 1, 1>, scalar_prefetch = 0 : i64, scratch_operands = 1 : i64, tpu.core_type = #tpu.core_type<tc>, window_params = [{transform_indices = @transform_0, window_bounds = array<i64: 16, 128>}, {pipeline_mode = #tpu.pipeline_mode<synchronous>, transform_indices = @transform_1, window_bounds = array<i64: 128, 128>}, {pipeline_mode = #tpu.pipeline_mode<synchronous>, transform_indices = @transform_2, window_bounds = array<i64: 1, 128>}, {pipeline_mode = #tpu.pipeline_mode<synchronous>, transform_indices = @transform_3, window_bounds = array<i64: 128, 128>}, {pipeline_mode = #tpu.pipeline_mode<synchronous>, transform_indices = @transform_4, window_bounds = array<i64: 1, 128>}, {transform_indices = @transform_5, window_bounds = array<i64: 16, 128>}]} {
    %c0_i32 = arith.constant 0 : i32
    %0 = arith.cmpi eq, %arg1, %c0_i32 : i32
    %1 = arith.extui %0 : i1 to i32
    %c0_i32_0 = arith.constant 0 : i32
    %2 = arith.cmpi ne, %1, %c0_i32_0 : i32
    scf.if %2 {
      %cst_19 = arith.constant 0.000000e+00 : f32
      %32 = vector.broadcast %cst_19 : f32 to vector<16x128xf32>
      %c0_20 = arith.constant 0 : index
      %c0_21 = arith.constant 0 : index
      %33 = vector.load %arg8[%c0_20, %c0_21] : memref<16x128xf32, #tpu.memory_space<vmem>>, vector<16x128xf32>
      tpu.vector_store %arg8[%c0_20, %c0_21], %32 {strides = array<i32>} : memref<16x128xf32, #tpu.memory_space<vmem>>, vector<16x128xf32>,
    } else {
    }
    %c0 = arith.constant 0 : index
    %c0_1 = arith.constant 0 : index
    %3 = vector.load %arg2[%c0, %c0_1] : memref<16x128xf32, #tpu.memory_space<vmem>>, vector<16x128xf32>
    %4 = arith.truncf %3 : vector<16x128xf32> to vector<16x128xbf16>
    %c0_2 = arith.constant 0 : index
    %c0_3 = arith.constant 0 : index
    %5 = vector.load %arg3[%c0_2, %c0_3] : memref<128x128xbf16, #tpu.memory_space<vmem>>, vector<128x128xbf16>
    %cst = arith.constant dense<0.000000e+00> : vector<16x128xf32>
    %6 = tpu.matmul %4, %5, %cst {dimension_numbers = #tpu.dot_dimension_numbers<[1], [0], [0], [1], [0, 0, 1, 1], [], []>} : vector<16x128xbf16>, vector<128x128xbf16>, vector<16x128xf32> -> vector<16x128xf32>
    %c0_4 = arith.constant 0 : index
    %c0_5 = arith.constant 0 : index
    %7 = vector.load %arg4[%c0_4, %c0_5] : memref<1x128xf32, #tpu.memory_space<vmem>>, vector<1x128xf32>
    %8 = vector.broadcast %7 : vector<1x128xf32> to vector<16x128xf32>
    %9 = arith.addf %6, %8 : vector<16x128xf32>
    %cst_6 = arith.constant 5.000000e-01 : f32
    %10 = vector.broadcast %cst_6 : f32 to vector<16x128xf32>
    %11 = arith.mulf %10, %9 : vector<16x128xf32>
    %cst_7 = arith.constant 4.471500e-02 : f32
    %12 = vector.broadcast %cst_7 : f32 to vector<16x128xf32>
    %13 = arith.mulf %12, %9 : vector<16x128xf32>
    %14 = arith.mulf %13, %9 : vector<16x128xf32>
    %15 = arith.mulf %14, %9 : vector<16x128xf32>
    %16 = arith.addf %9, %15 : vector<16x128xf32>
    %cst_8 = arith.constant 0.797884583 : f32
    %17 = vector.broadcast %cst_8 : f32 to vector<16x128xf32>
    %18 = arith.mulf %17, %16 : vector<16x128xf32>
    %19 = math.tanh %18 : vector<16x128xf32>
    %cst_9 = arith.constant 1.000000e+00 : f32
    %20 = vector.broadcast %cst_9 : f32 to vector<16x128xf32>
    %21 = arith.addf %20, %19 : vector<16x128xf32>
    %22 = arith.mulf %11, %21 : vector<16x128xf32>
    %c0_10 = arith.constant 0 : index
    %c0_11 = arith.constant 0 : index
    %23 = vector.load %arg8[%c0_10, %c0_11] : memref<16x128xf32, #tpu.memory_space<vmem>>, vector<16x128xf32>
    %24 = arith.truncf %22 : vector<16x128xf32> to vector<16x128xbf16>
    %c0_12 = arith.constant 0 : index
    %c0_13 = arith.constant 0 : index
    %25 = vector.load %arg5[%c0_12, %c0_13] : memref<128x128xbf16, #tpu.memory_space<vmem>>, vector<128x128xbf16>
    %cst_14 = arith.constant dense<0.000000e+00> : vector<16x128xf32>
    %26 = tpu.matmul %24, %25, %cst_14 {dimension_numbers = #tpu.dot_dimension_numbers<[1], [0], [0], [1], [0, 0, 1, 1], [], []>} : vector<16x128xbf16>, vector<128x128xbf16>, vector<16x128xf32> -> vector<16x128xf32>
    %27 = arith.addf %23, %26 : vector<16x128xf32>
    %c0_15 = arith.constant 0 : index
    %c0_16 = arith.constant 0 : index
    %28 = vector.load %arg8[%c0_15, %c0_16] : memref<16x128xf32, #tpu.memory_space<vmem>>, vector<16x128xf32>
    tpu.vector_store %arg8[%c0_15, %c0_16], %27 {strides = array<i32>} : memref<16x128xf32, #tpu.memory_space<vmem>>, vector<16x128xf32>,
    %c0_i32_17 = arith.constant 0 : i32
    %29 = arith.cmpi eq, %arg1, %c0_i32_17 : i32
    %30 = arith.extui %29 : i1 to i32
    %c0_i32_18 = arith.constant 0 : i32
    %31 = arith.cmpi ne, %30, %c0_i32_18 : i32
    scf.if %31 {
      %c0_19 = arith.constant 0 : index
      %c0_20 = arith.constant 0 : index
      %32 = vector.load %arg8[%c0_19, %c0_20] : memref<16x128xf32, #tpu.memory_space<vmem>>, vector<16x128xf32>
      %c0_21 = arith.constant 0 : index
      %c0_22 = arith.constant 0 : index
      %33 = vector.load %arg6[%c0_21, %c0_22] : memref<1x128xf32, #tpu.memory_space<vmem>>, vector<1x128xf32>
      %34 = vector.broadcast %33 : vector<1x128xf32> to vector<16x128xf32>
      %35 = arith.addf %32, %34 : vector<16x128xf32>
      %c0_23 = arith.constant 0 : index
      %c0_24 = arith.constant 0 : index
      %36 = vector.load %arg7[%c0_23, %c0_24] : memref<16x128xf32, #tpu.memory_space<vmem>>, vector<16x128xf32>
      tpu.vector_store %arg7[%c0_23, %c0_24], %35 {strides = array<i32>} : memref<16x128xf32, #tpu.memory_space<vmem>>, vector<16x128xf32>,
    } else {
    }
    return
  }
  func.func @transform_0(%arg0: i32, %arg1: i32) -> (i32, i32) {
    %c0_i32 = arith.constant 0 : i32
    %c0_i32_0 = arith.constant 0 : i32
    return %arg0, %c0_i32 : i32, i32
  }
  func.func @transform_1(%arg0: i32, %arg1: i32) -> (i32, i32) {
    %c0_i32 = arith.constant 0 : i32
    %c0_i32_0 = arith.constant 0 : i32
    return %c0_i32, %arg1 : i32, i32
  }
  func.func @transform_2(%arg0: i32, %arg1: i32) -> (i32, i32) {
    %c0_i32 = arith.constant 0 : i32
    %c0_i32_0 = arith.constant 0 : i32
    return %c0_i32, %arg1 : i32, i32
  }
  func.func @transform_3(%arg0: i32, %arg1: i32) -> (i32, i32) {
    %c0_i32 = arith.constant 0 : i32
    %c0_i32_0 = arith.constant 0 : i32
    return %arg1, %c0_i32 : i32, i32
  }
  func.func @transform_4(%arg0: i32, %arg1: i32) -> (i32, i32) {
    %c0_i32 = arith.constant 0 : i32
    %c0_i32_0 = arith.constant 0 : i32
    %c0_i32_1 = arith.constant 0 : i32
    return %c0_i32, %c0_i32_0 : i32, i32
  }
  func.func @transform_5(%arg0: i32, %arg1: i32) -> (i32, i32) {
    %c0_i32 = arith.constant 0 : i32
    %c0_i32_0 = arith.constant 0 : i32
    return %arg0, %c0_i32 : i32, i32
  }
}

</mosaic_0001>

<bundles_post_ra>
// kernel: tpu_custom_call.1
= control target key start
LH: loop header
LB: loop body
LE: loop exit
PB: predicated region body
PF: predicated region fallthrough
CT: control target
= control target key end

     0   :  { %10 = vsyncpa [#allocation4], 0  ;;  %s553_s0 = inlined_call_operand.hbm [shape: f32[16,128], index: 0, kind: input, shape index: {}]   ;;  %s554_s1 = inlined_call_operand.hbm [shape: bf16[128,128], index: 1, kind: input, shape index: {}]   ;;  %s555_s2 = inlined_call_operand.vmem [shape: f32[1,128], index: 2, kind: input, shape index: {}]   ;;  %s556_s3 = inlined_call_operand.hbm [shape: bf16[128,128], index: 3, kind: input, shape index: {}]   ;;  %s557_s4 = inlined_call_operand.vmem [shape: f32[1,128], index: 4, kind: input, shape index: {}]   ;;  %s558_s5 = inlined_call_operand.hbm [shape: f32[16,128], index: 5, kind: output, shape index: {}]  }
   0x1   :  { %11 = vsyncpa [#allocation7], 0  ;;  %s30_s20 = sshll.u32 %s554_s1, 4  ;;  %s31_s20 = int_to_ptr.hbm [resolvable:$true] %s30_s20 }
   0x2   :  { %12 = vsyncpa [#allocation5], 0  ;;  %s491_s21 = smov [#allocation6]   ;;  %s17_s25 = sshll.u32 %s553_s0, 4  ;;  %s18_s25 = int_to_ptr.hbm [resolvable:$true] %s17_s25 }
   0x3   :  { %s32_s22 = sshll.u32 %s491_s21, 4  ;;  %s492_s26 = smov 64   ;;  %s33_s22 = int_to_ptr.vmem [resolvable:$true] %s32_s22 }
   0x4   :  { %s493_s27 = smov 4   ;;  %s494_s28 = smov [#allocation3]  }
   0x5   :  { %38 = dma.hbm_to_vmem [thread:$0]  %s31_s20, 1024, %s33_s22, [#allocation7], %s492_s26, %s492_s26, %s493_s27  }
   0x6   :  { %s19_s29 = sshll.u32 %s494_s28, 4  ;;  %s495_s30 = smov 128   ;;  %s20_s29 = int_to_ptr.vmem [resolvable:$true] %s19_s29 }
   0x7   :  { %s496_s6 = smov 8   ;;  %s45_s8 = sshll.u32 %s556_s3, 4  ;;  %s46_s8 = int_to_ptr.hbm [resolvable:$true] %s45_s8 }
   0x8   :  { %25 = dma.hbm_to_vmem [thread:$0]  %s18_s25, 256, %s20_s29, [#allocation4], %s495_s30, %s495_s30, %s496_s6  }
   0x9   :  { %s497_s9 = smov [#allocation8]  }
   0xa   :  { %s47_s0 = sshll.u32 %s497_s9, 4  ;;  %s48_s0 = int_to_ptr.vmem [resolvable:$true] %s47_s0 }
   0xb   :  { %53 = dma.hbm_to_vmem [thread:$0]  %s46_s8, 1024, %s48_s0, [#allocation7], %s492_s26, %s492_s26, %s493_s27  }
   0xc   :  { %485 = dma.done.wait [#allocation4], 256  }
   0xd   :  { %486 = vsyncadd [#allocation4], 4294967040 }
   0xe   :  { %487 = dma.done.wait [#allocation7], 2048  }
   0xf   :  { %488 = vsyncadd [#allocation7], 4294965248  ;;  %v366_v0 = vld [vmem:[#allocation6 + $0x38] sm:$0xff]  ;;  %v365_v1 = vld [vmem:[#allocation6 + $0x30] sm:$0xff]  ;;  %s498_s12 = smov [#allocation9]   ;;  %s281_s16 = sshll.u32 %s558_s5, 4  ;;  %s282_s16 = int_to_ptr.hbm [resolvable:$true] %s281_s16 }
  0x10   :  { %145 = vmatpush.bf16.msra.mxu0 %v366_v0  ;;  %v364_v2 = vld [vmem:[#allocation6 + $0x28] sm:$0xff]  ;;  %v363_v3 = vld [vmem:[#allocation6 + $0x20] sm:$0xff]  ;;  %v362_v4 = vld [vmem:[#allocation6 + $0x18] sm:$0xff]  ;;  %s279_s13 = sshll.u32 %s498_s12, 4  ;;  %s280_s13 = int_to_ptr.vmem [resolvable:$true] %s279_s13 }
  0x11   :  { %v361_v5 = vld [vmem:[#allocation6 + $0x10] sm:$0xff]  ;;  %v360_v6 = vld [vmem:[#allocation6 + $0x8] sm:$0xff]  ;;  %v359_v7 = vld [vmem:[#allocation6] sm:$0xff] }
  0x12   :  { %v74_v8 = vld [vmem:[#allocation3] sm:$0xff]  ;;  %v75_v9 = vld [vmem:[#allocation3 + $0x8] sm:$0xff]  ;;  %v372_v13 = vld [vmem:[#allocation8 + $0x28] sm:$0xff] }
  0x13   :  { %v76_v10 = vpack.c.bf16 %v75_v9, %v74_v8  ;;  %v374_v11 = vld [vmem:[#allocation8 + $0x38] sm:$0xff]  ;;  %v373_v12 = vld [vmem:[#allocation8 + $0x30] sm:$0xff]  ;;  %v371_v14 = vld [vmem:[#allocation8 + $0x20] sm:$0xff] }
  0x14   :  { %146 = vmatpush.bf16.msra.mxu0 %v365_v1  ;;  %244 = vmatpush.bf16.msra.mxu1 %v374_v11  ;;  %v370_v15 = vld [vmem:[#allocation8 + $0x18] sm:$0xff]  ;;  %v369_v16 = vld [vmem:[#allocation8 + $0x10] sm:$0xff]  ;;  %v368_v17 = vld [vmem:[#allocation8 + $0x8] sm:$0xff] }
  0x15   :  { %v367_v18 = vld [vmem:[#allocation8] sm:$0xff]  ;;  %v383_v19 = vld [vmem:[%s555_s2] ss:$0 sm:$0xff] }
  0x16   :  { %v384_v43 = vld [vmem:[%s557_s4] ss:$0 sm:$0xff] }
  0x18   :  { %147 = vmatpush.bf16.msra.mxu0 %v364_v2  ;;  %245 = vmatpush.bf16.msra.mxu1 %v373_v12 }
  0x1c   :  { %148 = vmatpush.bf16.msra.mxu0 %v363_v3  ;;  %246 = vmatpush.bf16.msra.mxu1 %v372_v13 }
  0x20   :  { %149 = vmatpush.bf16.msra.mxu0 %v362_v4  ;;  %247 = vmatpush.bf16.msra.mxu1 %v371_v14 }
  0x24   :  { %150 = vmatpush.bf16.msra.mxu0 %v361_v5  ;;  %248 = vmatpush.bf16.msra.mxu1 %v370_v15 }
  0x28   :  { %151 = vmatpush.bf16.msra.mxu0 %v360_v6  ;;  %249 = vmatpush.bf16.msra.mxu1 %v369_v16 }
  0x2c   :  { %152 = vmatpush.bf16.msra.mxu0 %v359_v7  ;;  %250 = vmatpush.bf16.msra.mxu1 %v368_v17 }
  0x2f   :  { %153 = vmatmul.bf16.vlgmr.msra.gmra.mxu0 %v76_v10 }
  0x30   :  { %251 = vmatpush.bf16.msra.mxu1 %v367_v18 }
  0xac   :  { %v154_v20 = vpop.f32.mrf.mxu0 }
  0xad   :  { %v155_v21 = vadd.f32 %v383_v19, %v154_v20 }
  0xaf   :  { %v161_v22 = vmul.f32 0.044715, %v155_v21  ;;  %v159_v37 = vmul.f32 0.5, %v155_v21 }
  0xb1   :  { %v163_v23 = vmul.f32 %v161_v22, %v155_v21 }
  0xb3   :  { %v165_v24 = vmul.f32 %v163_v23, %v155_v21 }
  0xb4   :  { %v156_v25 = vpop.f32.mrf.mxu0 }
  0xb5   :  { %v157_v26 = vadd.f32 %v383_v19, %v156_v25  ;;  %v167_v27 = vadd.f32 %v165_v24, %v155_v21 }
  0xb7   :  { %v162_v28 = vmul.f32 0.044715, %v157_v26  ;;  %v169_v30 = vmul.f32 0.7978846, %v167_v27  ;;  %v160_v38 = vmul.f32 0.5, %v157_v26 }
  0xb9   :  { %v164_v29 = vmul.f32 %v162_v28, %v157_v26  ;;  %385 = vtanh.f32 %v169_v30 }
  0xbb   :  { %v166_v31 = vmul.f32 %v164_v29, %v157_v26 }
  0xbd   :  { %v168_v32 = vadd.f32 %v166_v31, %v157_v26 }
  0xbf   :  { %v170_v33 = vmul.f32 0.7978846, %v168_v32  ;;  %v386_v34 = vpop.eup %385 }
  0xc0   :  { %v173_v35 = vadd.f32 1.0, %v386_v34 }
  0xc1   :  { %387 = vtanh.f32 %v170_v33 }
  0xc2   :  { %v175_v40 = vmul.f32 %v173_v35, %v159_v37 }
  0xc7   :  { %v388_v36 = vpop.eup %387 }
  0xc8   :  { %v174_v39 = vadd.f32 1.0, %v388_v36 }
  0xca   :  { %v176_v41 = vmul.f32 %v174_v39, %v160_v38 }
  0xcc   :  { %v179_v42 = vpack.c.bf16 %v176_v41, %v175_v40 }
  0xce   :  { %252 = vmatmul.bf16.vlgmr.msra.gmra.mxu1 %v179_v42 }
 0x14b   :  { %v253_v44 = vpop.f32.mrf.mxu1 }
 0x14c   :  { %v271_v45 = vadd.f32 %v384_v43, %v253_v44 }
 0x14e   :  { %273 = vst [vmem:[#allocation9] sm:$0xff] %v271_v45 }
 0x153   :  { %v255_v46 = vpop.f32.mrf.mxu1 }
 0x154   :  { %v272_v47 = vadd.f32 %v384_v43, %v255_v46 }
 0x156   :  { %274 = vst [vmem:[#allocation9 + $0x8] sm:$0xff] %v272_v47 }
 0x157   :  { %287 = dma.vmem_to_hbm [thread:$0]  %s280_s13, 256, %s282_s16, [#allocation5], %s495_s30, %s495_s30, %s496_s6  }
 0x158   :  { %489 = dma.done.wait [#allocation5], 256  }
 0x159   :  { %490 = vsyncadd [#allocation5], 4294967040 }
 0x15a   :  { %292 = vsyncpa [#allocation4], 1 }
 0x15b   :  { %293 = vsyncpa [#allocation7], 1 }
 0x15c   :  { %294 = vsyncpa [#allocation5], 1 }

</bundles_post_ra>
